<compile_context>
chip_gen: v7x
topology: tpu7x:2x2x1
jax: 0.10.0
libtpu: 0.0.40
codegen_flags: <defaults>
</compile_context>

<pallas_src>
import jax
import jax.numpy as jnp
from jax.experimental import pallas as pl
from jax.experimental.pallas import tpu as pltpu


def binary_classifier_kernel(x_ref, w1_ref, b1_ref, w2_ref, b2_ref, out_ref):
    # x_ref:  [TB, F] (stream dtype)     w1_ref: [F, H] (stream dtype)
    # b1_ref: [1, H] f32                 w2_ref: [1, H] f32
    # b2_ref: [1, 1] f32 (SMEM)          out_ref: [1, TB] f32
    x = x_ref[...]

    # linear1 on the MXU (f32 accumulation) + bias; ReLU on the VPU.
    h = jnp.dot(x, w1_ref[...], preferred_element_type=jnp.float32)
    h = jnp.maximum(h + b1_ref[...], 0.0)                     # [TB, H] f32

    # dropout (eval mode) -> identity.

    # linear2 (N=1): VPU multiply + XLU lane reduction, not a 1-column matmul.
    s = jnp.sum(h * w2_ref[...], axis=-1) + b2_ref[0, 0]      # [TB]

    # Numerically stable sigmoid: z = exp(-|s|) is in (0, 1], never overflows.
    #   s >= 0: 1 / (1 + z)      s < 0: z / (1 + z)
    z = jnp.exp(-jnp.abs(s))                                  # EUP
    inv = pl.reciprocal(1.0 + z, approx=True)                 # EUP (free slot)
    sig = jnp.where(s >= 0.0, inv, z * inv)                   # [TB]

    out_ref[...] = sig.reshape(out_ref.shape).astype(out_ref.dtype)


def _choose_batch_tile(batch, feat, elem_bytes, target_bytes):
    """Batch tile that streams ~target_bytes of x per grid step.

    Multiple of 128 (keeps the (1, TB) output block lane-dense and the (TB, F)
    x block sublane-aligned); keeps >= ~4 grid steps when the batch allows so
    the DMA pipeline actually overlaps.
    """
    tb = target_bytes // max(1, feat * elem_bytes)
    tb = max(128, (tb // 128) * 128)
    # Never bigger than the (128-padded) batch.
    tb = min(tb, max(128, pl.cdiv(batch, 128) * 128))
    # Keep at least ~4 pipeline steps when the batch is big enough.
    if batch >= 4 * 128:
        tb = min(tb, max(128, (batch // (4 * 128)) * 128))
    return tb


def binary_classifier(x, w1, b1, w2_row, b2, *,
                      target_tile_bytes=2 * 1024 * 1024,
                      stream_dtype=jnp.bfloat16):
    """Fused BinaryClassifier forward (eval-mode dropout).

    x:      [B, F] float32
    w1:     [F, H]   (= PyTorch linear1.weight.T)
    b1:     [1, H]   (= PyTorch linear1.bias[None, :])
    w2_row: [1, H]   (= PyTorch linear2.weight)
    b2:     [1, 1]   (= PyTorch linear2.bias[None, :])
    returns [B, 1] float32 sigmoid scores.
    """
    B, F = x.shape
    H = w1.shape[1]

    elem_bytes = jnp.dtype(stream_dtype).itemsize
    TB = _choose_batch_tile(B, F, elem_bytes, target_tile_bytes)

    # Pad the batch up to a multiple of TB (never collapse to one huge block).
    B_pad = pl.cdiv(B, TB) * TB
    x_s = x.astype(stream_dtype)
    if B_pad != B:
        x_s = jnp.pad(x_s, ((0, B_pad - B), (0, 0)))
    w1_s = w1.astype(stream_dtype)
    b1_f = b1.astype(jnp.float32)
    w2_f = w2_row.astype(jnp.float32)
    b2_f = b2.astype(jnp.float32)

    grid = (B_pad // TB,)

    # Explicit VMEM budget: double-buffered x / out tiles + resident weights,
    # with 2x headroom (comfortably inside v7x's 64 MiB physical VMEM).
    est = (2 * TB * F * elem_bytes      # x (double-buffered)
           + 2 * F * H * elem_bytes     # w1
           + 4 * H * 4                  # b1, w2 (double-buffered)
           + 2 * TB * 4)                # output row (double-buffered)
    vmem_limit = int(min(64 * 1024 * 1024, max(16 * 1024 * 1024, 2 * est)))

    out_row = pl.pallas_call(
        binary_classifier_kernel,
        out_shape=jax.ShapeDtypeStruct((1, B_pad), jnp.float32),
        grid_spec=pltpu.PrefetchScalarGridSpec(
            num_scalar_prefetch=0,
            grid=grid,
            in_specs=[
                pl.BlockSpec((TB, F), lambda i: (i, 0)),        # x: batch-tiled
                pl.BlockSpec((F, H), lambda i: (0, 0)),         # W1: resident
                pl.BlockSpec((1, H), lambda i: (0, 0)),         # b1: resident
                pl.BlockSpec((1, H), lambda i: (0, 0)),         # W2 row: resident
                pl.BlockSpec(memory_space=pltpu.MemorySpace.SMEM),  # b2 scalar
            ],
            out_specs=pl.BlockSpec((1, TB), lambda i: (0, i)),  # lane-dense row
        ),
        compiler_params=pltpu.CompilerParams(
            # Batch tiles are independent; lets Mosaic shard them across the
            # two TensorCores on v7x (no-op on v5e/v6e).
            dimension_semantics=("parallel",),
            vmem_limit_bytes=vmem_limit,
        ),
    )(x_s, w1_s, b1_f, w2_f, b2_f)

    return out_row[0, :B].reshape(B, 1)


if __name__ == "__main__":
    # Small shapes consistent with the module (feat_dim -> feat_dim//2 -> 1).
    # B=520 exercises both multi-step batch tiling (TB=128, grid=(5,)) and the
    # pad-to-multiple-of-TB path (520 -> 640).
    B = 520
    FEAT_DIM = 32
    HIDDEN = FEAT_DIM // 2

    key = jax.random.PRNGKey(0)
    k_x, k_w1, k_b1, k_w2, k_b2 = jax.random.split(key, 5)

    x = jax.random.normal(k_x, (B, FEAT_DIM), dtype=jnp.float32)

    # Deterministic uniform init (like PyTorch's default Linear init).
    bound1 = 1.0 / jnp.sqrt(FEAT_DIM)
    w1 = jax.random.uniform(k_w1, (FEAT_DIM, HIDDEN), jnp.float32, -bound1, bound1)
    b1 = jax.random.uniform(k_b1, (1, HIDDEN), jnp.float32, -bound1, bound1)

    bound2 = 1.0 / jnp.sqrt(HIDDEN)
    w2_row = jax.random.uniform(k_w2, (1, HIDDEN), jnp.float32, -bound2, bound2)
    b2 = jax.random.uniform(k_b2, (1, 1), jnp.float32, -bound2, bound2)

    out = binary_classifier(x, w1, b1, w2_row, b2)
    out = jax.block_until_ready(out)

    # Pure-JAX reference (eval-mode dropout == identity). Inputs are cast
    # through bf16 to mirror the kernel's streaming dtype; math stays f32.
    x16 = x.astype(jnp.bfloat16).astype(jnp.float32)
    w1_16 = w1.astype(jnp.bfloat16).astype(jnp.float32)
    h_ref = jnp.maximum(x16 @ w1_16 + b1, 0.0)
    ref = jax.nn.sigmoid(h_ref @ w2_row.T + b2)

    assert out.shape == (B, 1)
    assert jnp.allclose(out, ref, atol=5e-3, rtol=5e-3), float(
        jnp.max(jnp.abs(out - ref))
    )

    print("KERNEL_OK")
</pallas_src>

<mosaic_0001>
module attributes {stable_mosaic.version = 11 : i64} {
  func.func @binary_classifier_kernel(%arg0: i32, %arg1: memref<128x32xbf16, #tpu.memory_space<vmem>>, %arg2: memref<32x16xbf16, #tpu.memory_space<vmem>>, %arg3: memref<1x16xf32, #tpu.memory_space<vmem>>, %arg4: memref<1x16xf32, #tpu.memory_space<vmem>>, %arg5: memref<1x1xf32, #tpu.memory_space<smem>>, %arg6: memref<1x128xf32, #tpu.memory_space<vmem>>) attributes {dimension_semantics = [#tpu.dimension_semantics<parallel>], iteration_bounds = array<i64: 5>, scalar_prefetch = 0 : i64, scratch_operands = 0 : i64, tpu.core_type = #tpu.core_type<tc>, window_params = [{transform_indices = @transform_0, window_bounds = array<i64: 128, 32>}, {pipeline_mode = #tpu.pipeline_mode<synchronous>, transform_indices = @transform_1, window_bounds = array<i64: 32, 16>}, {pipeline_mode = #tpu.pipeline_mode<synchronous>, transform_indices = @transform_2, window_bounds = array<i64: 1, 16>}, {pipeline_mode = #tpu.pipeline_mode<synchronous>, transform_indices = @transform_3, window_bounds = array<i64: 1, 16>}, {transform_indices = @transform_4, window_bounds = array<i64: 1, 1>}, {transform_indices = @transform_5, window_bounds = array<i64: 1, 128>}]} {
    %c0 = arith.constant 0 : index
    %c0_0 = arith.constant 0 : index
    %0 = vector.load %arg1[%c0, %c0_0] : memref<128x32xbf16, #tpu.memory_space<vmem>>, vector<128x32xbf16>
    %c0_1 = arith.constant 0 : index
    %c0_2 = arith.constant 0 : index
    %1 = vector.load %arg2[%c0_1, %c0_2] : memref<32x16xbf16, #tpu.memory_space<vmem>>, vector<32x16xbf16>
    %cst = arith.constant dense<0.000000e+00> : vector<128x16xf32>
    %2 = tpu.matmul %0, %1, %cst {dimension_numbers = #tpu.dot_dimension_numbers<[1], [0], [0], [1], [0, 0, 1, 1], [], []>} : vector<128x32xbf16>, vector<32x16xbf16>, vector<128x16xf32> -> vector<128x16xf32>
    %c0_3 = arith.constant 0 : index
    %c0_4 = arith.constant 0 : index
    %3 = vector.load %arg3[%c0_3, %c0_4] : memref<1x16xf32, #tpu.memory_space<vmem>>, vector<1x16xf32>
    %4 = vector.broadcast %3 : vector<1x16xf32> to vector<128x16xf32>
    %5 = arith.addf %2, %4 : vector<128x16xf32>
    %cst_5 = arith.constant 0.000000e+00 : f32
    %6 = vector.broadcast %cst_5 : f32 to vector<128x16xf32>
    %7 = arith.maximumf %5, %6 : vector<128x16xf32>
    %c0_6 = arith.constant 0 : index
    %c0_7 = arith.constant 0 : index
    %8 = vector.load %arg4[%c0_6, %c0_7] : memref<1x16xf32, #tpu.memory_space<vmem>>, vector<1x16xf32>
    %9 = vector.broadcast %8 : vector<1x16xf32> to vector<128x16xf32>
    %10 = arith.mulf %7, %9 : vector<128x16xf32>
    %cst_8 = arith.constant dense<0.000000e+00> : vector<128xf32>
    %11 = vector.multi_reduction <add>, %10, %cst_8 [1] : vector<128x16xf32> to vector<128xf32>
    %c0_9 = arith.constant 0 : index
    %c0_10 = arith.constant 0 : index
    %12 = memref.load %arg5[%c0_9, %c0_10] : memref<1x1xf32, #tpu.memory_space<smem>>
    %13 = vector.broadcast %12 : f32 to vector<128xf32>
    %14 = arith.addf %11, %13 : vector<128xf32>
    %15 = math.absf %14 : vector<128xf32>
    %cst_11 = arith.constant 0.000000e+00 : f32
    %16 = vector.broadcast %cst_11 : f32 to vector<128xf32>
    %17 = arith.subf %16, %15 : vector<128xf32>
    %18 = math.exp %17 : vector<128xf32>
    %cst_12 = arith.constant 1.000000e+00 : f32
    %19 = vector.broadcast %cst_12 : f32 to vector<128xf32>
    %20 = arith.addf %19, %18 : vector<128xf32>
    %21 = tpu.reciprocal %20 {approx = true} : vector<128xf32> -> vector<128xf32>
    %cst_13 = arith.constant 0.000000e+00 : f32
    %22 = vector.broadcast %cst_13 : f32 to vector<128xf32>
    %23 = arith.cmpf oge, %14, %22 : vector<128xf32>
    %24 = arith.mulf %18, %21 : vector<128xf32>
    %25 = arith.select %23, %21, %24 : vector<128xi1>, vector<128xf32>
    %26 = vector.shape_cast %25 : vector<128xf32> to vector<1x128xf32>
    %c0_14 = arith.constant 0 : index
    %c0_15 = arith.constant 0 : index
    %27 = vector.load %arg6[%c0_14, %c0_15] : memref<1x128xf32, #tpu.memory_space<vmem>>, vector<1x128xf32>
    tpu.vector_store %arg6[%c0_14, %c0_15], %26 {strides = array<i32>} : memref<1x128xf32, #tpu.memory_space<vmem>>, vector<1x128xf32>,
    return
  }
  func.func @transform_0(%arg0: i32) -> (i32, i32) {
    %c0_i32 = arith.constant 0 : i32
    %c0_i32_0 = arith.constant 0 : i32
    return %arg0, %c0_i32 : i32, i32
  }
  func.func @transform_1(%arg0: i32) -> (i32, i32) {
    %c0_i32 = arith.constant 0 : i32
    %c0_i32_0 = arith.constant 0 : i32
    %c0_i32_1 = arith.constant 0 : i32
    return %c0_i32, %c0_i32_0 : i32, i32
  }
  func.func @transform_2(%arg0: i32) -> (i32, i32) {
    %c0_i32 = arith.constant 0 : i32
    %c0_i32_0 = arith.constant 0 : i32
    %c0_i32_1 = arith.constant 0 : i32
    return %c0_i32, %c0_i32_0 : i32, i32
  }
  func.func @transform_3(%arg0: i32) -> (i32, i32) {
    %c0_i32 = arith.constant 0 : i32
    %c0_i32_0 = arith.constant 0 : i32
    %c0_i32_1 = arith.constant 0 : i32
    return %c0_i32, %c0_i32_0 : i32, i32
  }
  func.func @transform_4(%arg0: i32) -> (i32, i32) {
    %c0_i32 = arith.constant 0 : i32
    %c0_i32_0 = arith.constant 0 : i32
    %c0_i32_1 = arith.constant 0 : i32
    return %c0_i32, %c0_i32_0 : i32, i32
  }
  func.func @transform_5(%arg0: i32) -> (i32, i32) {
    %c0_i32 = arith.constant 0 : i32
    %c0_i32_0 = arith.constant 0 : i32
    return %c0_i32, %arg0 : i32, i32
  }
}

</mosaic_0001>

<bundles_post_ra>
// kernel: tpu_custom_call.1
= control target key start
LH: loop header
LB: loop body
LE: loop exit
PB: predicated region body
PF: predicated region fallthrough
CT: control target
= control target key end

     0   :  { %s1630_s0 = inlined_call_operand.vmem [shape: bf16[640,32], index: 0, kind: input, shape index: {}]   ;;  %s1631_s1 = inlined_call_operand.vmem [shape: bf16[32,16], index: 1, kind: input, shape index: {}]   ;;  %s1632_s2 = inlined_call_operand.vmem [shape: f32[1,16], index: 2, kind: input, shape index: {}]   ;;  %s1633_s3 = inlined_call_operand.vmem [shape: f32[1,16], index: 3, kind: input, shape index: {}]   ;;  %s1634_s4 = inlined_call_operand.<no memory space> [shape: f32[1,1], index: 4, kind: input, shape index: {}]   ;;  %s1635_s5 = inlined_call_operand.hbm [shape: f32[1,640], index: 5, kind: output, shape index: {}]  }
   0x1   :  { %10 = sst [smem:[#allocation2]] %s1634_s4 }
   0x2   :  { %11 = vsyncpa [#allocation4], 0 }
   0x3   :  { %13 = vsyncpa [#allocation4 + $0x1], 0  ;;  %s1148_s20 = smov 0   ;;  %s1150_s21 = smov 0  }
   0x4   :  { %s1152_s22 = smov 0   ;;  %s1154_s23 = smov 0  }
   0x5 LB: > { %s873_s4 = sadd.s32 4294967295, %s1112_s23   ;;  %s874_s24 = sadd.s32 4294967294, %s1112_s23   ;;  %s1112_s23 = sphi %s1154_s23, %s1647_s23   ;;  %s1108_s22 = sphi %s1152_s22, %s1646_s22   ;;  %s1104_s21 = sphi %s1150_s21, %s1645_s21   ;;  %s1100_s20 = sphi %s1148_s20, %s1644_s20  }
   0x6   : > { %s1171_s25 = sadd.s32 1, %s1112_s23   ;;  %s136_s26 = sadd.s32 1, %s1108_s22 }
   0x7   : > { %s133_s27 = ssub.s32 %s1112_s23, %s1171_s25  ;;  %p146_p0 = scmp.ne.s32.totalorder %s1108_s22, %s1104_s21 }
   0x8   : > { %p134_p1 = scmp.eq.s32.totalorder %s133_s27, 0  ;;  %p147_p2 = scmp.eq.s32.totalorder %s873_s4, 4 }
   0x9   : > { %p152_p3 = scmp.ne.s32.totalorder %s1104_s21, %s1100_s20  ;;  %p153_p4 = scmp.eq.s32.totalorder %s874_s24, 4 }
   0xa   : > { %s1181_s28 = scalar_select %p134_p1, %s1108_s22, %s136_s26  }
   0xb   : > { %p1183_p5 = por %p147_p2, %p146_p0  ;;  %p1187_p6 = por %p153_p4, %p152_p3 }
   0xc   : > { %p877_p7 = scmp.ge.s32.totalorder %s1112_s23, 1  ;;  %p192_p8 = scmp.lt.s32.totalorder %s1112_s23, 6 }
   0xe   : > { %p193_p9 = pnand %p877_p7, %p192_p8 }
   0xf   : > { %v976_v0 = vld [vmem:[%s1631_s1] sm:$0xff] (!%p193_p9)   ;;  %s1196_s8 = sshll.u32 (!%p193_p9), %s873_s4, 4  ;;  %v977_v1 = vld [vmem:[%s1631_s1 + $0x8] sm:$0xff] (!%p193_p9)   ;;  %vm305_vm0 = vcmask (!%p193_p9), 261120   ;;  %vm466_vm1 = vcmask (!%p193_p9), 130048   ;;  %s515_s4 = sld [smem:[#allocation2]] (!%p193_p9) }
  0x10   : > { %196 = sbr.rel (%p193_p9) target bundleno = 474 (0x1da), region = 40  ;;  %p220_p10 = scmp.lt.s32.totalorder (!%p193_p9), %s1196_s8, 79  ;;  %913 = vmatprep.subr.bf16.mxu0 (!%p193_p9), %v976_v0  ;;  %933 = vmatprep.subr.bf16.mxu1 (!%p193_p9), %v976_v0  ;;  %v1217_v10 = vld [vmem:[%s1632_s2] ss:$0 sm:$0xff] (!%p193_p9)  ;;  %vm704_vm2 = vcmask (!%p193_p9), 130112   ;;  %vm711_vm3 = vcmask (!%p193_p9), 195712  }
  0x11   : > { %914 = vmatpush3.bf16.msra.mxu0 (!%p193_p9), %v976_v0  ;;  %935 = vmatpush3.bf16.msra.mxu1 (!%p193_p9), %v976_v0  ;;  %v1224_v17 = vld [vmem:[%s1633_s3] ss:$0 sm:$0xff] (!%p193_p9)  ;;  %vm718_vm6 = vcmask (!%p193_p9), 261312   ;;  %vm725_vm7 = vcmask (!%p193_p9), 326912   ;;  %vm732_vm9 = vcmask (!%p193_p9), 392512   ;;  %vm739_vm11 = vcmask (!%p193_p9), 458112   ;;  %s1586_s9 = scalar_lea.hbm (!%p193_p9), %s1635_s5, %s1196_s8 }
  0x12   : > { %915 = vmatprep.subr.bf16.mxu0 (!%p193_p9), %v977_v1  ;;  %934 = vmatprep.subr.bf16.mxu1 (!%p193_p9), %v977_v1  ;;  %vm746_vm14 = vcmask (!%p193_p9), 523712   ;;  %s217_s24 = sand.u32 (!%p193_p9), 1, %s1104_s21  }
  0x13   : > { %s218_s26 = scalar_lea.vmem (!%p193_p9), [#allocation3], %s217_s24  ;;  %s807_s10 = scalar_lea.sflag (!%p193_p9), [#allocation4], %s217_s24 }
  0x14   : > { %s819_s27 = sshll.u32 (!%p193_p9), %s218_s26, 4  ;;  %s1588_s27 = int_to_ptr.vmem [resolvable:$true] %s819_s27 }
  0x15   : > { %916 = vmatpush3.bf16.msra.mxu0 (!%p193_p9), %v977_v1  ;;  %936 = vmatpush3.bf16.msra.mxu1 (!%p193_p9), %v977_v1 }
  0x17   : > { %s221_s11 = scalar_select %p220_p10, %s1196_s8, 79 }
  0x19   : > { %s879_s12 = sshll.u32 %s221_s11, 2  ;;  %s1050_s11 = scalar_lea.vmem %s1588_s27, 16 }
  0x1a   : > { %s223_s15 = scalar_lea.vmem %s1630_s0, %s879_s12  ;;  %p1051_p11 = scmp.ne.s32.totalorder %s1588_s27, %s1050_s11 }
  0x1b   : > { %v978_v2 = vld [vmem:[%s223_s15] sm:$0xff]   ;;  %v979_v3 = vld [vmem:[%s223_s15 + $0x8] sm:$0xff]   ;;  %v982_v6 = vld [vmem:[%s223_s15 + $0x10] sm:$0xff]   ;;  %s1114_s12 = smov [#allocation3]  }
  0x1c   : > { %917 = vmatprep.mubr.msk.bf16.mxu0 %vm305_vm0, %v978_v2  ;;  %v980_v4 = vld [vmem:[%s223_s15 + $0x20] sm:$0xff]   ;;  %v981_v5 = vld [vmem:[%s223_s15 + $0x28] sm:$0xff]   ;;  %v984_v7 = vld [vmem:[%s223_s15 + $0x30] sm:$0xff]   ;;  %p1052_p12 = pnand %p1051_p11, %p1183_p5  ;;  %s1054_s13 = sshll.u32 %s1114_s12, 4  ;;  %s1055_s13 = int_to_ptr.vmem [resolvable:$false] %s1054_s13 }
  0x1d   : > { %918 = vmatmul.mubr.msk.bf16.vlgmr.msra.gmra.mrb[0].mxu0 %vm305_vm0, %v979_v3  ;;  %925 = vmatprep.mubr.msk.bf16.mxu1 %vm305_vm0, %v980_v4  ;;  %v983_v8 = vld [vmem:[%s223_s15 + $0x18] sm:$0xff]   ;;  %s1056_s14 = scalar_lea.vmem %s1055_s13, 32  ;;  %p1057_p0 = scmp.lt.s32.totalorder %s1588_s27, %s1055_s13 }
  0x1e   : > { %926 = vmatmul.mubr.msk.bf16.vlgmr.msra.gmra.mrb[0].mxu1 %vm305_vm0, %v981_v5  ;;  %921 = vmatprep.mubr.msk.bf16.mxu0 %vm305_vm0, %v982_v6  ;;  %v985_v9 = vld [vmem:[%s223_s15 + $0x38] sm:$0xff]   ;;  %p1053_p13 = pneg %p1052_p12  ;;  %p1058_p1 = scmp.lt.s32.totalorder %s1056_s14, %s1050_s11 }
  0x1f   : > { %929 = vmatprep.mubr.msk.bf16.mxu1 %vm305_vm0, %v984_v7 }
  0x20   : > { %p1059_p2 = por %p1058_p1, %p1057_p0 }
  0x22   : > { %p1060_p3 = pnand %p1059_p2, %p1053_p13 }
  0x25   : > { %922 = vmatmul.mubr.msk.bf16.gmra.mrb[4].mxu0 %vm305_vm0, %v983_v8 }
  0x26   : > { %930 = vmatmul.mubr.msk.bf16.gmra.mrb[4].mxu1 %vm305_vm0, %v985_v9  ;;  %vm753_vm0 = vcmask 589312  }
  0xf0   : > { %v919_v11 = vpop.f32.mrb[0].mxu0 }
  0xf1   : > { %v373_v12 = vadd.f32 %v919_v11, %v1217_v10  ;;  %v364_v13 = vpop.f32.mrb[1].mxu0  ;;  %v927_v15 = vpop.f32.mrb[0].mxu1 }
  0xf2   : > { %v365_v14 = vadd.f32 %v1217_v10, %v364_v13  ;;  %v920_v16 = vpop.f32.mrb[2].mxu0  ;;  %v396_v20 = vpop.f32.mrb[1].mxu1  ;;  %v405_v61 = vadd.f32 %v927_v15, %v1217_v10 }
  0xf3   : > { %v429_v18 = vmax.f32 %v373_v12, 0.0  ;;  %v376_v19 = vadd.f32 %v920_v16, %v1217_v10  ;;  %v367_v21 = vpop.f32.mrb[3].mxu0  ;;  %v397_v23 = vadd.f32 %v1217_v10, %v396_v20  ;;  %v928_v25 = vpop.f32.mrb[2].mxu1 }
  0xf4   : > { %v427_v22 = vmax.f32 %v365_v14, 0.0  ;;  %v368_v24 = vadd.f32 %v1217_v10, %v367_v21  ;;  %v399_v27 = vpop.f32.mrb[3].mxu1  ;;  %v408_v57 = vadd.f32 %v928_v25, %v1217_v10  ;;  %v437_v5 = vmax.f32 %v405_v61, 0.0 }
  0xf5   : > { %v430_v26 = vmax.f32 %v376_v19, 0.0  ;;  %v452_v28 = vmul.f32 %v1224_v17, %v429_v18  ;;  %v435_v29 = vmax.f32 %v397_v23, 0.0  ;;  %v400_v30 = vadd.f32 %v1217_v10, %v399_v27 }
  0xf6   : > { %v450_v31 = vmul.f32 %v1224_v17, %v427_v22  ;;  %v428_v34 = vmax.f32 %v368_v24, 0.0  ;;  %v438_v3 = vmax.f32 %v408_v57, 0.0  ;;  %v460_v16 = vmul.f32 %v1224_v17, %v437_v5 }
  0xf7   : > { %v473_v32 = vsel %vm466_vm1, %v452_v28, 0.0  ;;  %v453_v33 = vmul.f32 %v1224_v17, %v430_v26  ;;  %v436_v35 = vmax.f32 %v400_v30, 0.0  ;;  %v458_v38 = vmul.f32 %v1224_v17, %v435_v29 }
  0xf8   : > { %474 = vadd.xlane.f32.xlu1 %v473_v32  ;;  %v923_v36 = vpop.f32.mrb[4].mxu0  ;;  %v467_v37 = vsel %vm466_vm1, %v450_v31, 0.0  ;;  %v451_v52 = vmul.f32 %v1224_v17, %v428_v34  ;;  %v461_v12 = vmul.f32 %v1224_v17, %v438_v3  ;;  %v497_v22 = vsel %vm466_vm1, %v460_v16, 0.0 }
  0xf9   : > { %v389_v39 = vadd.f32 %v923_v36, %v1217_v10  ;;  %468 = vadd.xlane.f32.xlu0 %v467_v37  ;;  %v380_v40 = vpop.f32.mrb[5].mxu0  ;;  %v491_v42 = vsel %vm466_vm1, %v458_v38, 0.0  ;;  %v931_v43 = vpop.f32.mrb[4].mxu1  ;;  %v476_v46 = vsel %vm466_vm1, %v453_v33, 0.0  ;;  %v459_v48 = vmul.f32 %v1224_v17, %v436_v35 }
  0xfa   : > { %v924_v41 = vpop.f32.mrb[6].mxu0  ;;  %v412_v49 = vpop.f32.mrb[5].mxu1  ;;  %v381_v50 = vadd.f32 %v1217_v10, %v380_v40  ;;  %v470_v63 = vsel %vm466_vm1, %v451_v52, 0.0  ;;  %v421_v13 = vadd.f32 %v931_v43, %v1217_v10  ;;  %v500_v20 = vsel %vm466_vm1, %v461_v12, 0.0 }
  0xfb   : > { %v433_v44 = vmax.f32 %v389_v39, 0.0  ;;  %v392_v45 = vadd.f32 %v924_v41, %v1217_v10  ;;  %v383_v47 = vpop.f32.mrb[7].mxu0  ;;  %v932_v53 = vpop.f32.mrb[6].mxu1  ;;  %v494_v59 = vsel %vm466_vm1, %v459_v48, 0.0  ;;  %v413_v6 = vadd.f32 %v1217_v10, %v412_v49 }
  0xfc   : > { %477 = vadd.xlane.f32.xlu1 %v476_v46  ;;  %v384_v51 = vadd.f32 %v1217_v10, %v383_v47  ;;  %v415_v55 = vpop.f32.mrb[7].mxu1  ;;  %v431_v62 = vmax.f32 %v381_v50, 0.0  ;;  %v424_v9 = vadd.f32 %v932_v53, %v1217_v10  ;;  %v441_v21 = vmax.f32 %v421_v13, 0.0 }
  0xfd   : > { %v434_v54 = vmax.f32 %v392_v45, 0.0  ;;  %492 = vadd.xlane.f32.xlu0 %v491_v42  ;;  %v456_v56 = vmul.f32 %v1224_v17, %v433_v44  ;;  %v416_v1 = vadd.f32 %v1217_v10, %v415_v55  ;;  %v439_v14 = vmax.f32 %v413_v6, 0.0 }
  0xfe   : > { %v432_v58 = vmax.f32 %v384_v51, 0.0  ;;  %v454_v7 = vmul.f32 %v1224_v17, %v431_v62  ;;  %v442_v19 = vmax.f32 %v424_v9, 0.0  ;;  %v464_v26 = vmul.f32 %v1224_v17, %v441_v21 }
  0xff   : > { %v457_v60 = vmul.f32 %v1224_v17, %v434_v54  ;;  %v485_v2 = vsel %vm466_vm1, %v456_v56, 0.0  ;;  %v440_v8 = vmax.f32 %v416_v1, 0.0  ;;  %v462_v23 = vmul.f32 %v1224_v17, %v439_v14 }
 0x100   : > { %495 = vadd.xlane.f32.xlu1 %v494_v59  ;;  %v455_v4 = vmul.f32 %v1224_v17, %v432_v58  ;;  %v479_v15 = vsel %vm466_vm1, %v454_v7, 0.0  ;;  %v465_v24 = vmul.f32 %v1224_v17, %v442_v19  ;;  %v509_v28 = vsel %vm466_vm1, %v464_v26, 0.0 }
 0x101   : > { %471 = vadd.xlane.f32.xlu0 %v470_v63  ;;  %v488_v0 = vsel %vm466_vm1, %v457_v60, 0.0  ;;  %v463_v18 = vmul.f32 %v1224_v17, %v440_v8  ;;  %v503_v25 = vsel %vm466_vm1, %v462_v23, 0.0  ;;  %v1272_v29 = vstv %s515_s4 }
 0x102   : > { %v482_v11 = vsel %vm466_vm1, %v455_v4, 0.0  ;;  %v512_v27 = vsel %vm466_vm1, %v465_v24, 0.0  ;;  %v693_v8 = vlaneseq }
 0x103   : > { %v506_v10 = vsel %vm466_vm1, %v463_v18, 0.0  ;;  %vm760_vm1 = vcmask 654912  }
 0x104   : > { %489 = vadd.xlane.f32.xlu1 %v488_v0  ;;  %v1328_v24 = vand.u32 127, %v693_v8 }
 0x105   : > { %486 = vadd.xlane.f32.xlu0 %v485_v2 }
 0x108   : > { %483 = vadd.xlane.f32.xlu1 %v482_v11 }
 0x109   : > { %480 = vadd.xlane.f32.xlu0 %v479_v15 }
 0x10c   : > { %501 = vadd.xlane.f32.xlu1 %v500_v20 }
 0x10d   : > { %498 = vadd.xlane.f32.xlu0 %v497_v22 }
 0x110   : > { %507 = vadd.xlane.f32.xlu1 %v506_v10 }
 0x111   : > { %504 = vadd.xlane.f32.xlu0 %v503_v25 }
 0x114   : > { %513 = vadd.xlane.f32.xlu1 %v512_v27 }
 0x115   : > { %510 = vadd.xlane.f32.xlu0 %v509_v28 }
 0x185   : > { %v475_v30 = vpop.xlane.xlu1 %474 }
 0x186   : > { %v1275_v31 = vadd.f32 %v1272_v29, %v475_v30  ;;  %v469_v32 = vpop.xlane.xlu0 %468 }
 0x187   : > { %v1278_v33 = vadd.f32 %v1272_v29, %v469_v32 }
 0x188   : > { %v535_v17 = vand.u32 2147483647, %v1275_v31  ;;  %vm631_vm8 = vcmp.ge.f32.partialorder %v1275_v31, 0.0 }
 0x189   : > { %v533_v34 = vand.u32 2147483647, %v1278_v33  ;;  %v478_v35 = vpop.xlane.xlu1 %477  ;;  %vm629_vm5 = vcmp.ge.f32.partialorder %v1278_v33, 0.0 }
 0x18a   : > { %v551_v36 = vsub.f32 0.0, %v535_v17  ;;  %v1283_v37 = vadd.f32 %v1272_v29, %v478_v35  ;;  %v493_v38 = vpop.xlane.xlu0 %492 }
 0x18b   : > { %v549_v39 = vsub.f32 0.0, %v533_v34  ;;  %v1286_v40 = vadd.f32 %v1272_v29, %v493_v38 }
 0x18c   : > { %v569_v41 = vmul.f32 1.442695, %v551_v36  ;;  %v536_v42 = vand.u32 2147483647, %v1283_v37  ;;  %vm632_vm10 = vcmp.ge.f32.partialorder %v1283_v37, 0.0 }
 0x18d   : > { %v565_v43 = vmul.f32 1.442695, %v549_v39  ;;  %v541_v44 = vand.u32 2147483647, %v1286_v40  ;;  %v496_v45 = vpop.xlane.xlu1 %495  ;;  %vm637_vm12 = vcmp.ge.f32.partialorder %v1286_v40, 0.0 }
 0x18e   : > { %986 = vpow2.f32 %v569_v41  ;;  %v552_v46 = vsub.f32 0.0, %v536_v42  ;;  %v1291_v47 = vadd.f32 %v1272_v29, %v496_v45  ;;  %v472_v48 = vpop.xlane.xlu0 %471 }
 0x18f   : > { %988 = vpow2.f32 %v565_v43  ;;  %v557_v49 = vsub.f32 0.0, %v541_v44  ;;  %v1294_v50 = vadd.f32 %v1272_v29, %v472_v48  ;;  %v1344_v43 = vshrl.u32 %v693_v8, 7 }
 0x190   : > { %v571_v51 = vmul.f32 1.442695, %v552_v46  ;;  %v542_v52 = vand.u32 2147483647, %v1291_v47  ;;  %v1349_v46 = vadd.s32 4294967280, %v1328_v24 }
 0x191   : > { %v581_v53 = vmul.f32 1.442695, %v557_v49  ;;  %v534_v54 = vand.u32 2147483647, %v1294_v50  ;;  %v490_v55 = vpop.xlane.xlu1 %489  ;;  %vm630_vm4 = vcmp.ge.f32.partialorder %v1294_v50, 0.0 }
 0x192   : > { %990 = vpow2.f32 %v571_v51  ;;  %v558_v56 = vsub.f32 0.0, %v542_v52  ;;  %v1299_v57 = vadd.f32 %v1272_v29, %v490_v55  ;;  %v487_v58 = vpop.xlane.xlu0 %486 }
 0x193   : > { %992 = vpow2.f32 %v581_v53  ;;  %v550_v59 = vsub.f32 0.0, %v534_v54  ;;  %v1302_v60 = vadd.f32 %v1272_v29, %v487_v58 }
 0x194   : > { %v583_v61 = vmul.f32 1.442695, %v558_v56  ;;  %v540_v62 = vand.u32 2147483647, %v1299_v57  ;;  %v1356_v56 = vadd.s32 4294967272, %v1328_v24 }
 0x195   : > { %v567_v63 = vmul.f32 1.442695, %v550_v59  ;;  %v539_v0 = vand.u32 2147483647, %v1302_v60  ;;  %v484_v1 = vpop.xlane.xlu1 %483  ;;  %vm635_vm13 = vcmp.ge.f32.partialorder %v1302_v60, 0.0 }
 0x196   : > { %994 = vpow2.f32 %v583_v61  ;;  %v556_v2 = vsub.f32 0.0, %v540_v62  ;;  %v1307_v3 = vadd.f32 %v1272_v29, %v484_v1  ;;  %v481_v4 = vpop.xlane.xlu0 %480  ;;  %v1364_v62 = vadd.s32 4294967232, %v1328_v24 }
 0x197   : > { %996 = vpow2.f32 %v567_v63  ;;  %v555_v5 = vsub.f32 0.0, %v539_v0  ;;  %v1310_v6 = vadd.f32 %v1272_v29, %v481_v4 }
 0x198   : > { %v1312_v7 = vpop.eup %986  ;;  %v579_v9 = vmul.f32 1.442695, %v556_v2  ;;  %v538_v11 = vand.u32 2147483647, %v1307_v3  ;;  %vm634_vm15 = vcmp.ge.f32.partialorder %v1307_v3, 0.0 }
 0x199   : > { %v1315_v12 = vpop.eup %988  ;;  %v599_v13 = vadd.f32 1.0, %v1312_v7  ;;  %v577_v14 = vmul.f32 1.442695, %v555_v5  ;;  %v537_v15 = vand.u32 2147483647, %v1310_v6  ;;  %v502_v16 = vpop.xlane.xlu1 %501 }
 0x19a   : > { %v597_v18 = vadd.f32 1.0, %v1315_v12  ;;  %998 = vpow2.f32 %v579_v9  ;;  %v554_v19 = vsub.f32 0.0, %v538_v11  ;;  %v1321_v20 = vadd.f32 %v1272_v29, %v502_v16  ;;  %v499_v21 = vpop.xlane.xlu0 %498 }
 0x19b   : > { %1000 = vrcp.f32 %v599_v13  ;;  %v553_v22 = vsub.f32 0.0, %v537_v15  ;;  %v1324_v23 = vadd.f32 %v1272_v29, %v499_v21  ;;  %v1376_v9 = vadd.s32 4294967224, %v1328_v24 }
 0x19c   : > { %v1326_v10 = vpop.eup %990  ;;  %1002 = vrcp.f32 %v597_v18  ;;  %v575_v25 = vmul.f32 1.442695, %v554_v19  ;;  %v544_v26 = vand.u32 2147483647, %v1321_v20  ;;  %v699_v15 = vadd.s32 4294967288, %v1328_v24 }
 0x19d   : > { %v1331_v27 = vpop.eup %992  ;;  %v600_v28 = vadd.f32 1.0, %v1326_v10  ;;  %1004 = vpow2.f32 %v577_v14  ;;  %v573_v30 = vmul.f32 1.442695, %v553_v22  ;;  %v543_v32 = vand.u32 2147483647, %v1324_v23  ;;  %v508_v17 = vpop.xlane.xlu1 %507 }
 0x19e   : > { %1006 = vpow2.f32 %v575_v25  ;;  %v560_v34 = vsub.f32 0.0, %v544_v26  ;;  %v505_v35 = vpop.xlane.xlu0 %504  ;;  %v605_v36 = vadd.f32 1.0, %v1331_v27  ;;  %v1337_v39 = vadd.f32 %v1272_v29, %v508_v17 }
 0x19f   : > { %v559_v38 = vsub.f32 0.0, %v543_v32  ;;  %v1340_v41 = vadd.f32 %v1272_v29, %v505_v35  ;;  %1008 = vrcp.f32 %v600_v28  ;;  %v697_v19 = vsub.s32 %v1328_v24, %v1344_v43 }
 0x1a0   : > { %v1342_v42 = vpop.eup %994  ;;  %v587_v44 = vmul.f32 1.442695, %v560_v34  ;;  %1010 = vpow2.f32 %v573_v30  ;;  %v546_v49 = vand.u32 2147483647, %v1337_v39  ;;  %v716_v25 = vsub.s32 %v1356_v56, %v1344_v43 }
 0x1a1   : > { %v1346_v45 = vpop.eup %996  ;;  %v585_v48 = vmul.f32 1.442695, %v559_v38  ;;  %v514_v51 = vpop.xlane.xlu1 %513  ;;  %v606_v52 = vadd.f32 1.0, %v1342_v42  ;;  %v545_v54 = vand.u32 2147483647, %v1340_v41  ;;  %v1392_v26 = vadd.s32 4294967240, %v1328_v24 }
 0x1a2   : > { %v598_v53 = vadd.f32 1.0, %v1346_v45  ;;  %1012 = vpow2.f32 %v587_v44  ;;  %v511_v55 = vpop.xlane.xlu0 %510  ;;  %v562_v58 = vsub.f32 0.0, %v546_v49  ;;  %v1359_v59 = vadd.f32 %v1272_v29, %v514_v51 }
 0x1a3   : > { %1014 = vrcp.f32 %v605_v36  ;;  %v561_v63 = vsub.f32 0.0, %v545_v54  ;;  %v1367_v0 = vadd.f32 %v1272_v29, %v511_v55  ;;  %v709_v29 = vsub.s32 %v1349_v46, %v1344_v43 }
 0x1a4   : > { %v1361_v61 = vpop.eup %998  ;;  %1016 = vrcp.f32 %v598_v53  ;;  %v591_v4 = vmul.f32 1.442695, %v562_v58  ;;  %v548_v5 = vand.u32 2147483647, %v1359_v59  ;;  %v702_v36 = vsub.s32 %v699_v15, %v1344_v43 }
 0x1a5   : > { %v1369_v1 = vpop.eup %1000  ;;  %v604_v2 = vadd.f32 1.0, %v1361_v61  ;;  %1018 = vpow2.f32 %v585_v48  ;;  %v589_v11 = vmul.f32 1.442695, %v561_v63  ;;  %v547_v13 = vand.u32 2147483647, %v1367_v0 }
 0x1a6   : > { %v1373_v8 = vpop.eup %1002  ;;  %1020 = vrcp.f32 %v606_v52  ;;  %v564_v16 = vsub.f32 0.0, %v548_v5  ;;  %v1405_v38 = vadd.s32 4294967248, %v1328_v24  ;;  %v1410_v49 = vadd.s32 4294967256, %v1328_v24 }
 0x1a7   : > { %v1379_v14 = vpop.eup %1004  ;;  %1022 = vrcp.f32 %v604_v2  ;;  %v563_v22 = vsub.f32 0.0, %v547_v13  ;;  %v1413_v51 = vadd.s32 4294967264, %v1328_v24  ;;  %v1421_v55 = vadd.s32 4294967208, %v1328_v24 }
 0x1a8   : > { %v1384_v18 = vpop.eup %1006  ;;  %v603_v21 = vadd.f32 1.0, %v1379_v14  ;;  %1024 = vpow2.f32 %v591_v4  ;;  %v595_v34 = vmul.f32 1.442695, %v564_v16  ;;  %v645_v2 = vmul.f32 %v1373_v8, %v1315_v12 }
 0x1a9   : > { %v602_v28 = vadd.f32 1.0, %v1384_v18  ;;  %1026 = vpow2.f32 %v589_v11  ;;  %v1395_v30 = vpop.eup %1008  ;;  %v593_v44 = vmul.f32 1.442695, %v563_v22  ;;  %v1427_v4 = vadd.s32 4294967216, %v1328_v24 }
 0x1aa   : > { %1028 = vrcp.f32 %v603_v21  ;;  %v1401_v35 = vpop.eup %1010  ;;  %v1430_v5 = vadd.s32 4294967192, %v1328_v24  ;;  %v737_v15 = vsub.s32 %v1405_v38, %v1344_v43  ;;  %v1438_v16 = vadd.s32 4294967200, %v1328_v24 }
 0x1ab   : > { %1030 = vrcp.f32 %v602_v28  ;;  %v601_v52 = vadd.f32 1.0, %v1401_v35  ;;  %v730_v21 = vsub.s32 %v1410_v49, %v1344_v43  ;;  %v723_v22 = vsub.s32 %v1413_v51, %v1344_v43 }
 0x1ac   : > { %v1407_v48 = vpop.eup %1012  ;;  %1032 = vpow2.f32 %v595_v34  ;;  %v647_v34 = vmul.f32 %v1369_v1, %v1312_v7  ;;  %v765_v17 = vsub.s32 %v1427_v4, %v1344_v43  ;;  %v1638_v49 = vsub.s32 %v1392_v26, %v1344_v43 }
 0x1ad   : > { %v1416_v53 = vpop.eup %1014  ;;  %v608_v58 = vadd.f32 1.0, %v1407_v48  ;;  %1034 = vpow2.f32 %v593_v44  ;;  %v1639_v38 = vsub.s32 %v1364_v62, %v1344_v43 }
 0x1ae   : > { %v1017_v63 = vpop.eup %1016  ;;  %1036 = vrcp.f32 %v601_v52  ;;  %v663_v32 = vsel %vm631_vm8, %v1369_v1, %v647_v34  ;;  %vm636_vm8 = vcmp.ge.f32.partialorder %v1299_v57, 0.0 }
 0x1af   : > { %v1432_v11 = vpop.eup %1018  ;;  %v646_v13 = vmul.f32 %v1017_v63, %v1346_v45  ;;  %1038 = vrcp.f32 %v608_v58  ;;  %v661_v58 = vsel %vm629_vm5, %v1373_v8, %v645_v2  ;;  %v648_v2 = vmul.f32 %v1395_v30, %v1326_v10 }
 0x1b0   : > { %v1440_v12 = vpop.eup %1020  ;;  %v607_v28 = vadd.f32 1.0, %v1432_v11  ;;  %vm774_vm5 = vcmask 786112  }
 0x1b1   : > { %v1448_v45 = vpop.eup %1022  ;;  %v662_v44 = vsel %vm630_vm4, %v1017_v63, %v646_v13  ;;  %v1468_v13 = vadd.s32 4294967176, %v1328_v24  ;;  %v698_v63 = vrot.slane %v661_v58, %v697_v19  ;;  %v710_v58 = vrot.slane %v663_v32, %v709_v29 }
 0x1b2   : > { %v1455_v50 = vpop.eup %1024  ;;  %1040 = vrcp.f32 %v607_v28  ;;  %v703_v7 = vrot.slane %v662_v44, %v702_v36  ;;  %v1475_v36 = vadd.s32 4294967184, %v1328_v24  ;;  %vm767_vm4 = vcmask 720512  }
 0x1b3   : > { %v1462_v54 = vpop.eup %1026  ;;  %v610_v33 = vadd.f32 1.0, %v1455_v50  ;;  %v654_v37 = vmul.f32 %v1440_v12, %v1342_v42 }
 0x1b4   : > { %v1029_v8 = vpop.eup %1028  ;;  %v609_v28 = vadd.f32 1.0, %v1462_v54  ;;  %v705_v1 = vsel %vm704_vm2, %v703_v7, %v698_v63  ;;  %v653_v63 = vmul.f32 %v1416_v53, %v1331_v27  ;;  %vm633_vm2 = vcmp.ge.f32.partialorder %v1310_v6, 0.0 }
 0x1b5   : > { %v1031_v44 = vpop.eup %1030  ;;  %1042 = vrcp.f32 %v610_v33  ;;  %v651_v24 = vmul.f32 %v1029_v8, %v1379_v14  ;;  %v652_v33 = vmul.f32 %v1448_v45, %v1361_v61  ;;  %v712_v46 = vsel %vm711_vm3, %v710_v58, %v705_v1 }
 0x1b6   : > { %v1482_v31 = vpop.eup %1032  ;;  %v650_v10 = vmul.f32 %v1031_v44, %v1384_v18  ;;  %1044 = vrcp.f32 %v609_v28  ;;  %v664_v18 = vsel %vm632_vm10, %v1395_v30, %v648_v2  ;;  %vm638_vm10 = vcmp.ge.f32.partialorder %v1291_v47, 0.0 }
 0x1b7   : > { %v1487_v52 = vpop.eup %1034  ;;  %v612_v19 = vadd.f32 1.0, %v1482_v31  ;;  %v717_v27 = vrot.slane %v664_v18, %v716_v25  ;;  %v667_v6 = vsel %vm635_vm13, %v1029_v8, %v651_v24  ;;  %v668_v42 = vsel %vm636_vm8, %v1448_v45, %v652_v33 }
 0x1b8   : > { %v1037_v34 = vpop.eup %1036  ;;  %v611_v14 = vadd.f32 1.0, %v1487_v52  ;;  %v666_v61 = vsel %vm634_vm15, %v1031_v44, %v650_v10  ;;  %v669_v56 = vsel %vm637_vm12, %v1416_v53, %v653_v63  ;;  %v670_v25 = vsel %vm638_vm10, %v1440_v12, %v654_v37 }
 0x1b9   : > { %v1039_v7 = vpop.eup %1038  ;;  %v649_v28 = vmul.f32 %v1037_v34, %v1401_v35  ;;  %1046 = vrcp.f32 %v612_v19  ;;  %v731_v57 = vrot.slane %v666_v61, %v730_v21  ;;  %v719_v60 = vsel %vm718_vm6, %v717_v27, %v712_v46 }
 0x1ba   : > { %1048 = vrcp.f32 %v611_v14  ;;  %v656_v32 = vmul.f32 %v1039_v7, %v1407_v48  ;;  %v738_v35 = vrot.slane %v667_v6, %v737_v15  ;;  %vm639_vm3 = vcmp.ge.f32.partialorder %v1324_v23, 0.0 }
 0x1bb   : > { %v665_v29 = vsel %vm633_vm2, %v1037_v34, %v649_v28  ;;  %v745_v51 = vrot.slane %v668_v42, %v1638_v49  ;;  %vm640_vm6 = vcmp.ge.f32.partialorder %v1321_v20, 0.0  ;;  %v752_v15 = vrot.slane %v669_v56, %v1639_v38 }
 0x1bc   : > { %v1041_v30 = vpop.eup %1040  ;;  %v724_v3 = vrot.slane %v665_v29, %v723_v22  ;;  %v672_v22 = vsel %vm640_vm6, %v1039_v7, %v656_v32  ;;  %v1640_v45 = vsub.s32 %v1376_v9, %v1344_v43  ;;  %v1641_v9 = vsub.s32 %v1421_v55, %v1344_v43 }
 0x1bd   : > { %v655_v47 = vmul.f32 %v1041_v30, %v1432_v11  ;;  %v800_v55 = vsub.s32 %v1468_v13, %v1344_v43  ;;  %vm644_vm12 = vcmp.ge.f32.partialorder %v1359_v59, 0.0  ;;  %vm643_vm13 = vcmp.ge.f32.partialorder %v1367_v0, 0.0 }
 0x1be   : > { %v726_v48 = vsel %vm725_vm7, %v724_v3, %v719_v60  ;;  %v759_v26 = vrot.slane %v670_v25, %v1640_v45  ;;  %vm781_vm7 = vcmask 851712   ;;  %v773_v10 = vrot.slane %v672_v22, %v1641_v9 }
 0x1bf   : > { %v1043_v40 = vpop.eup %1042  ;;  %v733_v53 = vsel %vm732_vm9, %v731_v57, %v726_v48  ;;  %v671_v11 = vsel %vm639_vm3, %v1041_v30, %v655_v47  ;;  %vm641_vm9 = vcmp.ge.f32.partialorder %v1340_v41, 0.0  ;;  %v1642_v41 = vsub.s32 %v1438_v16, %v1344_v43 }
 0x1c0   : > { %v1045_v12 = vpop.eup %1044  ;;  %v740_v21 = vsel %vm739_vm11, %v738_v35, %v733_v53  ;;  %v658_v23 = vmul.f32 %v1043_v40, %v1455_v50  ;;  %v766_v62 = vrot.slane %v671_v11, %v765_v17  ;;  %v793_v50 = vsub.s32 %v1475_v36, %v1344_v43 }
 0x1c1   : > { %v747_v8 = vsel %vm746_vm14, %v745_v51, %v740_v21  ;;  %v657_v20 = vmul.f32 %v1045_v12, %v1462_v54  ;;  %vm642_vm11 = vcmp.ge.f32.partialorder %v1337_v39, 0.0  ;;  %vm788_vm14 = vcmask 917312  }
 0x1c2   : > { %v754_v2 = vsel %vm753_vm0, %v752_v15, %v747_v8  ;;  %v674_v17 = vsel %vm642_vm11, %v1043_v40, %v658_v23  ;;  %v1643_v16 = vsub.s32 %v1430_v5, %v1344_v43  ;;  %vm795_vm15 = vcmask 982912  }
 0x1c3   : > { %v1047_v44 = vpop.eup %1046  ;;  %v761_v1 = vsel %vm760_vm1, %v759_v26, %v754_v2  ;;  %v673_v54 = vsel %vm641_vm9, %v1045_v12, %v657_v20  ;;  %vm802_vm0 = vcmask 1048512  }
 0x1c4   : > { %v1049_v24 = vpop.eup %1048  ;;  %v768_v4 = vsel %vm767_vm4, %v766_v62, %v761_v1  ;;  %v780_v19 = vrot.slane %v673_v54, %v1642_v41  ;;  %v660_v36 = vmul.f32 %v1047_v44, %v1482_v31  ;;  %v787_v31 = vrot.slane %v674_v17, %v1643_v16 }
 0x1c5   : > { %v775_v34 = vsel %vm774_vm5, %v773_v10, %v768_v4  ;;  %v659_v39 = vmul.f32 %v1049_v24, %v1487_v52 }
 0x1c6   : > { %v782_v58 = vsel %vm781_vm7, %v780_v19, %v775_v34  ;;  %v676_v18 = vsel %vm644_vm12, %v1047_v44, %v660_v36 }
 0x1c7   : > { %v675_v33 = vsel %vm643_vm13, %v1049_v24, %v659_v39  ;;  %v801_v52 = vrot.slane %v676_v18, %v800_v55  ;;  %v789_v13 = vsel %vm788_vm14, %v787_v31, %v782_v58 }
 0x1c8   : > { %v794_v59 = vrot.slane %v675_v33, %v793_v50 }
 0x1ca   : > { %v796_v14 = vsel %vm795_vm15, %v794_v59, %v789_v13 }
 0x1cb   : > { %v803_v43 = vsel %vm802_vm0, %v801_v52, %v796_v14 }
 0x1cc   : > { %805 = vst [vmem:[%s218_s26] sm:$0x1] %v803_v43 }
 0x1cd   : > { %1063 = shalt.err (!%p1060_p3)
}
 0x1ce   : > { %s1064_s8 = scalar_lea.hbm %s1586_s9, 16  ;;  %s1068_s17 = scalar_lea.hbm %s1635_s5, 80 }
 0x1cf   : > { %p1065_p4 = scmp.ne.s32.totalorder %s1586_s9, %s1064_s8  ;;  %p1069_p9 = scmp.lt.u32.totalorder %s1586_s9, %s1635_s5 }
 0x1d0   : > { %p1070_p10 = scmp.lt.u32.totalorder %s1068_s17, %s1064_s8  ;;  %p1072_p12 = scmp.lt.u32.totalorder %s1064_s8, %s1586_s9 }
 0x1d1   : > { %p1066_p7 = pnand %p1065_p4, %p1183_p5 }
 0x1d2   : > { %p1071_p11 = por %p1070_p10, %p1069_p9 }
 0x1d3   : > { %p1067_p8 = pneg %p1066_p7 }
 0x1d4   : > { %p1073_p13 = por %p1072_p12, %p1071_p11 }
 0x1d6   : > { %p1074_p0 = pnand %p1073_p13, %p1067_p8 }
 0x1d8   : > { %1077 = shalt.err (!%p1074_p0)
}
 0x1d9   : > { %937 = dma.vmem_to_hbm [thread:$0]  (%p1183_p5), %s1588_s27, 16, %s1586_s9, %s807_s10  }
 0x1da PF: > { %p943_p1 = scmp.ge.s32.totalorder %s1112_s23, 2  ;;  %s831_s4 = sand.u32 1, %s1100_s20  }
 0x1db   : > { %s832_s24 = scalar_lea.sflag [#allocation4], %s831_s4 }
 0x1dc   : > { %p940_p2 = pnand %p943_p1, %p1187_p6 }
 0x1de   : > { %1095 = dma.done.wait (!%p940_p2), %s832_s24, 16  }
 0x1df   : > { %1097 = vsyncadd (!%p940_p2), %s832_s24, 4294967280  ;;  %p16_p3 = scmp.ge.s32.totalorder %s1171_s25, 7   ;;  %s1644_s20 = smov %s1104_s21 }
 0x1e0   : > { %s1645_s21 = smov %s1108_s22  ;;  %s1646_s22 = smov %s1181_s28 }
 0x1e1   : > { %s1647_s23 = smov %s1171_s25  ;;  %18 = sbr.rel (!%p16_p3) target bundleno = 5 (0x5), region = 75 }
 0x1e8   :  { %836 = vsyncpa [#allocation4], 1 }
 0x1e9   :  { %838 = vsyncpa [#allocation4 + $0x1], 1 }

</bundles_post_ra>
